<compile_context>
chip_gen: v5e
topology: v5e:2x2
jax: 0.10.0
libtpu: 0.0.40
codegen_flags: <defaults>
</compile_context>

<pallas_src>
import jax
import jax.numpy as jnp
from jax.experimental import pallas as pl
from jax.experimental.pallas import tpu as pltpu

LANE = 128
MAX_ROW_TILE = 2048  # 2048 * 128 * 4 B = 1 MiB per input tile


def _bce_logits_kernel(x_ref, y_ref, partial_ref):
    z = x_ref[...].astype(jnp.float32)
    y = y_ref[...].astype(jnp.float32)

    # Numerically stable BCE-with-logits per element:
    #   max(z, 0) - z*y + log1p(exp(-|z|))
    # exp/log go to the EUP (its own bundle slot), the rest is VPU elementwise;
    # the kernel stays HBM-bandwidth-bound.
    per_elem = jnp.maximum(z, 0.0) - z * y + jnp.log1p(jnp.exp(-jnp.abs(z)))

    # Fold (row_tile, 128) -> (8, 128): the reshape keeps whole (8,128) vreg tiles
    # intact (pure view), and the sum over the leading axis is plain vreg adds.
    # The expensive cross-lane/sublane reduce is paid exactly once, in the wrapper.
    rt = per_elem.shape[0]
    folded = jnp.sum(per_elem.reshape(rt // 8, 8, LANE), axis=0)
    partial_ref[...] = folded.reshape(1, 8, LANE)


def bce_with_logits_loss(x, y):
    """Mean BCEWithLogits loss over all elements. x: raw logits, y: targets in [0,1]."""
    assert x.shape == y.shape
    total = x.size

    xf = x.reshape(-1)
    yf = y.reshape(-1)

    # Lane-align: rows must be a multiple of 8 (sublane) and of the row tile.
    rows = max(pl.cdiv(total, LANE), 8)
    rows = ((rows + 7) // 8) * 8
    row_tile = min(MAX_ROW_TILE, rows)
    rows = ((rows + row_tile - 1) // row_tile) * row_tile
    pad = rows * LANE - total
    if pad:
        # (z=200, y=1) padding contributes exactly 0 to the sum in f32.
        xf = jnp.concatenate([xf, jnp.full((pad,), 200.0, dtype=xf.dtype)])
        yf = jnp.concatenate([yf, jnp.ones((pad,), dtype=yf.dtype)])

    x2 = xf.reshape(rows, LANE)
    y2 = yf.reshape(rows, LANE)
    grid = (rows // row_tile,)

    partials = pl.pallas_call(
        _bce_logits_kernel,
        out_shape=jax.ShapeDtypeStruct((grid[0], 8, LANE), jnp.float32),
        grid_spec=pltpu.PrefetchScalarGridSpec(
            num_scalar_prefetch=0,
            grid=grid,
            in_specs=[
                pl.BlockSpec((row_tile, LANE), lambda i: (i, 0)),
                pl.BlockSpec((row_tile, LANE), lambda i: (i, 0)),
            ],
            out_specs=pl.BlockSpec((1, 8, LANE), lambda i: (i, 0, 0)),
        ),
        compiler_params=pltpu.CompilerParams(
            dimension_semantics=("parallel",),
        ),
    )(x2, y2)

    # Tiny final reduce + mean over the *true* element count.
    return jnp.sum(partials) / jnp.float32(total)


if __name__ == "__main__":
    key = jax.random.PRNGKey(0)
    kx, ky = jax.random.split(key)

    # Shapes consistent with a conv-autoencoder-style output: NCHW = (2, 4, 16, 16)
    B, C, H, W = 2, 4, 16, 16
    x = jax.random.normal(kx, (B, C, H, W), dtype=jnp.float32)    # raw logits
    y = jax.random.uniform(ky, (B, C, H, W), dtype=jnp.float32)   # soft targets in [0,1]

    loss = bce_with_logits_loss(x, y)
    jax.block_until_ready(loss)

    # Pure-JAX reference (same stable formulation PyTorch BCEWithLogitsLoss uses).
    ref = jnp.mean(jnp.maximum(x, 0.0) - x * y + jnp.log1p(jnp.exp(-jnp.abs(x))))
    assert jnp.allclose(loss, ref, rtol=1e-5, atol=1e-6), (loss, ref)

    print("KERNEL_OK")
</pallas_src>

<mosaic_0001>
module attributes {stable_mosaic.version = 11 : i64} {
  func.func @_bce_logits_kernel(%arg0: i32, %arg1: memref<16x128xf32, #tpu.memory_space<vmem>>, %arg2: memref<16x128xf32, #tpu.memory_space<vmem>>, %arg3: memref<1x8x128xf32, #tpu.memory_space<vmem>>) attributes {dimension_semantics = [#tpu.dimension_semantics<parallel>], iteration_bounds = array<i64: 1>, scalar_prefetch = 0 : i64, scratch_operands = 0 : i64, tpu.core_type = #tpu.core_type<tc>, window_params = [{transform_indices = @transform_0, window_bounds = array<i64: 16, 128>}, {transform_indices = @transform_1, window_bounds = array<i64: 16, 128>}, {transform_indices = @transform_2, window_bounds = array<i64: 1, 8, 128>}]} {
    %c0 = arith.constant 0 : index
    %c0_0 = arith.constant 0 : index
    %0 = vector.load %arg1[%c0, %c0_0] : memref<16x128xf32, #tpu.memory_space<vmem>>, vector<16x128xf32>
    %c0_1 = arith.constant 0 : index
    %c0_2 = arith.constant 0 : index
    %1 = vector.load %arg2[%c0_1, %c0_2] : memref<16x128xf32, #tpu.memory_space<vmem>>, vector<16x128xf32>
    %cst = arith.constant 0.000000e+00 : f32
    %2 = vector.broadcast %cst : f32 to vector<16x128xf32>
    %3 = arith.maximumf %0, %2 : vector<16x128xf32>
    %4 = arith.mulf %0, %1 : vector<16x128xf32>
    %5 = arith.subf %3, %4 : vector<16x128xf32>
    %6 = math.absf %0 : vector<16x128xf32>
    %cst_3 = arith.constant 0.000000e+00 : f32
    %7 = vector.broadcast %cst_3 : f32 to vector<16x128xf32>
    %8 = arith.subf %7, %6 : vector<16x128xf32>
    %9 = math.exp %8 : vector<16x128xf32>
    %10 = math.log1p %9 : vector<16x128xf32>
    %11 = arith.addf %5, %10 : vector<16x128xf32>
    %12 = vector.shape_cast %11 : vector<16x128xf32> to vector<2x8x128xf32>
    %cst_4 = arith.constant dense<0.000000e+00> : vector<8x128xf32>
    %13 = vector.multi_reduction <add>, %12, %cst_4 [0] : vector<2x8x128xf32> to vector<8x128xf32>
    %14 = vector.shape_cast %13 : vector<8x128xf32> to vector<1x8x128xf32>
    %c0_5 = arith.constant 0 : index
    %c0_6 = arith.constant 0 : index
    %c0_7 = arith.constant 0 : index
    %15 = vector.load %arg3[%c0_5, %c0_6, %c0_7] : memref<1x8x128xf32, #tpu.memory_space<vmem>>, vector<1x8x128xf32>
    tpu.vector_store %arg3[%c0_5, %c0_6, %c0_7], %14 {strides = array<i32>} : memref<1x8x128xf32, #tpu.memory_space<vmem>>, vector<1x8x128xf32>,
    return
  }
  func.func @transform_0(%arg0: i32) -> (i32, i32) {
    %c0_i32 = arith.constant 0 : i32
    %c0_i32_0 = arith.constant 0 : i32
    return %arg0, %c0_i32 : i32, i32
  }
  func.func @transform_1(%arg0: i32) -> (i32, i32) {
    %c0_i32 = arith.constant 0 : i32
    %c0_i32_0 = arith.constant 0 : i32
    return %arg0, %c0_i32 : i32, i32
  }
  func.func @transform_2(%arg0: i32) -> (i32, i32, i32) {
    %c0_i32 = arith.constant 0 : i32
    %c0_i32_0 = arith.constant 0 : i32
    %c0_i32_1 = arith.constant 0 : i32
    return %arg0, %c0_i32, %c0_i32_0 : i32, i32, i32
  }
}

</mosaic_0001>

<bundles_post_ra>
// kernel: tpu_custom_call.1
= control target key start
LH: loop header
LB: loop body
LE: loop exit
PB: predicated region body
PF: predicated region fallthrough
CT: control target
= control target key end

     0   :  { %7 = vsyncpa [#allocation3], 0  ;;  %s222_s0 = inlined_call_operand.hbm [shape: f32[16,128], index: 0, kind: input, shape index: {}]   ;;  %s223_s1 = inlined_call_operand.hbm [shape: f32[16,128], index: 1, kind: input, shape index: {}]   ;;  %s224_s2 = inlined_call_operand.hbm [shape: f32[1,8,128], index: 2, kind: output, shape index: {}]  }
   0x1   :  { %8 = vsyncpa [#allocation6], 0 }
   0x2   :  { %9 = vsyncpa [#allocation4], 0  ;;  %s14_s11 = sshll.u32 %s222_s0, 4  ;;  %s193_s12 = smov [#allocation2]   ;;  %s15_s11 = int_to_ptr.hbm [resolvable:$true] %s14_s11 }
   0x3   :  { %s16_s13 = sshll.u32 %s193_s12, 4  ;;  %s27_s16 = sshll.u32 %s223_s1, 4  ;;  %s17_s13 = int_to_ptr.vmem [resolvable:$true] %s16_s13  ;;  %s28_s16 = int_to_ptr.hbm [resolvable:$true] %s27_s16 }
   0x4   :  { %s194_s17 = smov 128   ;;  %s195_s18 = smov 8  }
   0x5   :  { %22 = dma.hbm_to_vmem [thread:$0]  %s15_s11, 256, %s17_s13, [#allocation3], %s194_s17, %s194_s17, %s195_s18  }
   0x6   :  { %s196_s19 = smov [#allocation5]  }
   0x7   :  { %s29_s20 = sshll.u32 %s196_s19, 4  ;;  %s30_s20 = int_to_ptr.vmem [resolvable:$true] %s29_s20 }
   0x8   :  { %35 = dma.hbm_to_vmem [thread:$0]  %s28_s16, 256, %s30_s20, [#allocation6], %s194_s17, %s194_s17, %s195_s18  }
   0x9   :  { %187 = dma.done.wait [#allocation3], 256  }
   0xa   :  { %188 = vsyncadd [#allocation3], 4294967040 }
   0xb   :  { %189 = dma.done.wait [#allocation6], 256  }
   0xc   :  { %190 = vsyncadd [#allocation6], 4294967040  ;;  %v44_v0 = vld [vmem:[#allocation2] sm:$0xff]  ;;  %v45_v1 = vld [vmem:[#allocation2 + $0x8] sm:$0xff]  ;;  %s197_s0 = smov [#allocation7]   ;;  %s91_s23 = sshll.u32 %s224_s2, 4  ;;  %s92_s23 = int_to_ptr.hbm [resolvable:$true] %s91_s23 }
   0xd   :  { %v54_v2 = vand.u32 2147483647, %v44_v0  ;;  %v55_v3 = vand.u32 2147483647, %v45_v1  ;;  %v46_v12 = vld [vmem:[#allocation5] sm:$0xff]  ;;  %v47_v15 = vld [vmem:[#allocation5 + $0x8] sm:$0xff] }
   0xe   :  { %v48_v17 = vmax.f32 %v44_v0, 0.0  ;;  %v50_v18 = vmul.f32 %v46_v12, %v44_v0  ;;  %v49_v21 = vmax.f32 %v45_v1, 0.0  ;;  %v51_v22 = vmul.f32 %v47_v15, %v45_v1  ;;  %s89_s1 = sshll.u32 %s197_s0, 4  ;;  %s90_s1 = int_to_ptr.vmem [resolvable:$true] %s89_s1 }
   0xf   :  { %v56_v4 = vsub.f32 0.0, %v54_v2  ;;  %v57_v5 = vsub.f32 0.0, %v55_v3 }
  0x10   :  { %v52_v26 = vsub.f32 %v48_v17, %v50_v18  ;;  %v53_v29 = vsub.f32 %v49_v21, %v51_v22 }
  0x11   :  { %v58_v6 = vmul.f32 1.442695, %v56_v4  ;;  %v60_v7 = vmul.f32 1.442695, %v57_v5 }
  0x13   :  { %107 = vpow2.f32 %v58_v6 }
  0x14   :  { %109 = vpow2.f32 %v60_v7 }
  0x19   :  { %v108_v8 = vpop.eup %107 }
  0x1a   :  { %v110_v9 = vpop.eup %109  ;;  %v62_v10 = vadd.f32 1.0, %v108_v8  ;;  %v65_v11 = vmul.f32 -0.5, %v108_v8  ;;  %v68_v19 = vand.u32 2147483647, %v108_v8 }
  0x1b   :  { %v71_v13 = vadd.f32 1.0, %v110_v9  ;;  %v74_v14 = vmul.f32 -0.5, %v110_v9  ;;  %v77_v23 = vand.u32 2147483647, %v110_v9 }
  0x1c   :  { %111 = vlog2.f32 %v62_v10  ;;  %v66_v16 = vadd.f32 1.0, %v65_v11  ;;  %vm69_vm0 = vcmp.lt.f32.partialorder %v68_v19, 0.0004427343 }
  0x1d   :  { %113 = vlog2.f32 %v71_v13  ;;  %v75_v20 = vadd.f32 1.0, %v74_v14  ;;  %vm78_vm1 = vcmp.lt.f32.partialorder %v77_v23, 0.0004427343 }
  0x1e   :  { %v67_v24 = vmul.f32 %v108_v8, %v66_v16 }
  0x1f   :  { %v76_v27 = vmul.f32 %v110_v9, %v75_v20 }
  0x22   :  { %v112_v25 = vpop.eup %111 }
  0x23   :  { %v114_v28 = vpop.eup %113  ;;  %v64_v30 = vmul.f32 0.6931472, %v112_v25 }
  0x24   :  { %v73_v31 = vmul.f32 0.6931472, %v114_v28 }
  0x25   :  { %v70_v32 = vsel %vm69_vm0, %v67_v24, %v64_v30 }
  0x26   :  { %v79_v33 = vsel %vm78_vm1, %v76_v27, %v73_v31  ;;  %v80_v34 = vadd.f32 %v70_v32, %v52_v26 }
  0x27   :  { %v81_v35 = vadd.f32 %v79_v33, %v53_v29 }
  0x29   :  { %v82_v36 = vadd.f32 %v81_v35, %v80_v34 }
  0x2b   :  { %83 = vst [vmem:[#allocation7] sm:$0xff] %v82_v36 }
  0x2c   :  { %94 = dma.vmem_to_hbm [thread:$0]  %s90_s1, 128, %s92_s23, [#allocation4]  }
  0x2d   :  { %191 = dma.done.wait [#allocation4], 128  }
  0x2e   :  { %192 = vsyncadd [#allocation4], 4294967168 }
  0x2f   :  { %99 = vsyncpa [#allocation3], 1 }
  0x30   :  { %100 = vsyncpa [#allocation6], 1 }
  0x31   :  { %101 = vsyncpa [#allocation4], 1 }

</bundles_post_ra>
